<compile_context>
chip_gen: v5e
topology: v5e:2x2
jax: 0.10.0
libtpu: 0.0.40
codegen_flags: <defaults>
</compile_context>

<pallas_src>
import jax
import jax.numpy as jnp
from jax.experimental import pallas as pl
from jax.experimental.pallas import tpu as pltpu


_LANE = 128


def _round_up(a, b):
    return (a + b - 1) // b * b


def _vmem_capacity_bytes():
    try:
        return int(pltpu.get_tpu_info().vmem_capacity_bytes)
    except Exception:
        return 64 * 1024 * 1024  # conservative fallback: v7x per-TensorCore VMEM


def _plan_tiling(NP, K, Cout, in_itemsize, out_itemsize):
    """Pick the lane tile TP (multiple of 128) and a generation-aware VMEM limit."""
    cap = _vmem_capacity_bytes()
    budget = int(cap * 0.55)  # headroom for params, (8,128) padding, compiler scratch

    # Per-lane bytes of the double-buffered input + output tiles (incl. sublane padding).
    k_pad = _round_up(K, max(8, 32 // in_itemsize))
    c_pad = _round_up(Cout, max(8, 32 // out_itemsize))
    per_lane = 2 * (k_pad * in_itemsize + c_pad * out_itemsize)

    max_tp = max(_LANE, (budget // per_lane) // _LANE * _LANE)
    tp = min(max_tp, 4096, _round_up(NP, _LANE))

    # Real requirement: 2-deep pipelined tiles + resident (double-buffered) params.
    need = tp * per_lane
    params = (_round_up(Cout, 16) * _round_up(K, _LANE) * in_itemsize
              + 2 * _round_up(K, 8) * _LANE * 4)
    vmem_limit = int(min(max(need + 2 * params + (8 << 20), 16 << 20),
                         int(cap * 0.85)))
    vmem_limit = max(vmem_limit, need + 2 * params + (1 << 20))  # never under-provision
    return tp, vmem_limit


def transition_kernel(x_ref, sb_ref, w_ref, o_ref):
    # x_ref:  (K, TP)    bf16   K = 4*Cin; row = (2*dh+dw)*Cin + c, lanes = (n, h2, w2)
    # sb_ref: (2, K, 1)  f32    [0] = gamma/sqrt(var+eps), [1] = beta - mean*scale (tiled 4x)
    # w_ref:  (Cout, K)  bf16   1x1 conv weight tiled over the 4 positions, 0.25 folded in
    # o_ref:  (Cout, TP)        lane-dense output tile
    x = x_ref[...].astype(jnp.float32)
    a = jnp.maximum(x * sb_ref[0] + sb_ref[1], 0.0)          # BN affine + ReLU (VPU, f32)
    # 1x1 conv + 2x2 avg-pool fused into a single MXU contraction over K = 4*Cin,
    # bf16 inputs, f32 accumulation.
    o_ref[...] = jnp.dot(w_ref[...], a.astype(jnp.bfloat16),
                         preferred_element_type=jnp.float32).astype(o_ref.dtype)


def transition_forward(x_nchw, gamma, beta, running_mean, running_var, conv_w,
                       eps=1e-5):
    N, Cin, H, W = x_nchw.shape
    Cout = conv_w.shape[0]
    assert H % 2 == 0 and W % 2 == 0, "avg_pool2d(2) expects even H and W"
    H2, W2 = H // 2, W // 2
    P = H2 * W2
    NP = N * P
    K = 4 * Cin

    act_dtype = jnp.bfloat16          # HBM-bound: bf16 halves the dominant traffic
    out_dtype = x_nchw.dtype

    # --- single wrapper-side repack, bf16 cast fused in (cast BEFORE the transpose):
    #     x4[(2*dh+dw)*Cin + c, (n*H2 + h2)*W2 + w2] = x[n, c, 2*h2+dh, 2*w2+dw]
    x4 = x_nchw.astype(act_dtype).reshape(N, Cin, H2, 2, W2, 2)
    x4 = jnp.transpose(x4, (3, 5, 1, 0, 2, 4)).reshape(K, NP)

    in_isz = jnp.dtype(act_dtype).itemsize
    out_isz = jnp.dtype(out_dtype).itemsize
    TP, vmem_limit = _plan_tiling(NP, K, Cout, in_isz, out_isz)
    NP_pad = _round_up(NP, TP)
    if NP_pad != NP:
        x4 = jnp.pad(x4, ((0, 0), (0, NP_pad - NP)))

    # --- fold BN (inference / running stats) into per-channel scale & bias (f32),
    #     tiled over the 4 window positions and packed into one operand ---
    inv_std = 1.0 / jnp.sqrt(running_var.astype(jnp.float32) + eps)
    scale = gamma.astype(jnp.float32) * inv_std
    bias = beta.astype(jnp.float32) - running_mean.astype(jnp.float32) * scale
    sb = jnp.stack([jnp.tile(scale, 4), jnp.tile(bias, 4)]).reshape(2, K, 1)

    # --- 1x1 conv weight: tile over the 4 positions, fold the 2x2 avg-pool 1/4 ---
    w = conv_w.reshape(Cout, Cin).astype(jnp.float32) * 0.25
    w4 = jnp.tile(w, (1, 4)).astype(act_dtype)                     # (Cout, K)

    grid = (NP_pad // TP,)
    cost = pl.CostEstimate(
        flops=2 * K * Cout * NP_pad,
        transcendentals=0,
        bytes_accessed=(K * NP_pad * in_isz + Cout * NP_pad * out_isz
                        + Cout * K * in_isz + 2 * K * 4),
    )

    out = pl.pallas_call(
        transition_kernel,
        out_shape=jax.ShapeDtypeStruct((Cout, NP_pad), out_dtype),
        grid_spec=pltpu.PrefetchScalarGridSpec(
            num_scalar_prefetch=0,
            grid=grid,
            in_specs=[
                pl.BlockSpec((K, TP), lambda j: (0, j)),
                pl.BlockSpec((2, K, 1), lambda j: (0, 0, 0)),
                pl.BlockSpec((Cout, K), lambda j: (0, 0)),
            ],
            out_specs=pl.BlockSpec((Cout, TP), lambda j: (0, j)),
        ),
        compiler_params=pltpu.CompilerParams(
            dimension_semantics=("parallel",),
            vmem_limit_bytes=vmem_limit),
        cost_estimate=cost,
    )(x4, sb, w4)

    # Kernel emits (Cout, N*H2*W2); one small permute of the smallest tensor in the
    # graph brings it back to NCHW.
    out = out[:, :NP].reshape(Cout, N, H2, W2)
    return jnp.transpose(out, (1, 0, 2, 3))


def transition_reference(x, gamma, beta, mean, var, conv_w, eps=1e-5,
                         act_dtype=jnp.float32):
    """Pure-JAX reference (inference-mode BN).  With act_dtype=bf16 it quantizes at
    the same points as the kernel (input, post-ReLU activation, weight)."""
    Cout, Cin = conv_w.shape[0], conv_w.shape[1]
    inv_std = 1.0 / jnp.sqrt(var.astype(jnp.float32) + eps)
    s = (gamma.astype(jnp.float32) * inv_std)[None, :, None, None]
    b = (beta.astype(jnp.float32)
         - mean.astype(jnp.float32) * gamma.astype(jnp.float32) * inv_std
         )[None, :, None, None]
    xq = x.astype(act_dtype).astype(jnp.float32)
    a = jnp.maximum(xq * s + b, 0.0)
    aq = a.astype(act_dtype).astype(jnp.float32)
    wq = conv_w.reshape(Cout, Cin).astype(jnp.float32).astype(act_dtype).astype(jnp.float32)
    y = jnp.einsum('nchw,oc->nohw', aq, wq, precision=jax.lax.Precision.HIGHEST)
    Nb, Co, Hy, Wy = y.shape
    return y.reshape(Nb, Co, Hy // 2, 2, Wy // 2, 2).mean(axis=(3, 5)).astype(x.dtype)


if __name__ == "__main__":
    # Small DenseNet-like shapes: in_planes=12, out_planes=6, 16x16 spatial, batch=2.
    N, Cin, H, W = 2, 12, 16, 16
    Cout = 6

    key = jax.random.PRNGKey(0)
    k_x, k_g, k_b, k_m, k_v, k_w = jax.random.split(key, 6)

    x = jax.random.normal(k_x, (N, Cin, H, W), dtype=jnp.float32)       # NCHW
    gamma = jax.random.uniform(k_g, (Cin,), minval=0.5, maxval=1.5, dtype=jnp.float32)
    beta = 0.1 * jax.random.normal(k_b, (Cin,), dtype=jnp.float32)
    running_mean = 0.1 * jax.random.normal(k_m, (Cin,), dtype=jnp.float32)
    running_var = jax.random.uniform(k_v, (Cin,), minval=0.5, maxval=1.5,
                                     dtype=jnp.float32)
    conv_w = jax.random.normal(k_w, (Cout, Cin, 1, 1), dtype=jnp.float32) * 0.1

    out = jax.block_until_ready(
        transition_forward(x, gamma, beta, running_mean, running_var, conv_w))

    assert out.shape == (N, Cout, H // 2, W // 2), out.shape
    assert out.dtype == x.dtype, out.dtype

    # (a) precision-policy-matched reference: catches layout / indexing bugs.
    ref_q = transition_reference(x, gamma, beta, running_mean, running_var, conv_w,
                                 act_dtype=jnp.bfloat16)
    assert jnp.allclose(out, ref_q, atol=1e-3, rtol=1e-3), (
        float(jnp.max(jnp.abs(out - ref_q))))

    # (b) full-f32 reference: end-to-end numerics sanity with bf16 activations.
    ref_f32 = transition_reference(x, gamma, beta, running_mean, running_var, conv_w,
                                   act_dtype=jnp.float32)
    assert jnp.allclose(out, ref_f32, atol=5e-2, rtol=5e-2), (
        float(jnp.max(jnp.abs(out - ref_f32))))

    print("KERNEL_OK")
</pallas_src>

<mosaic_0001>
module attributes {stable_mosaic.version = 11 : i64} {
  func.func @transition_kernel(%arg0: i32, %arg1: memref<48x128xbf16, #tpu.memory_space<vmem>>, %arg2: memref<2x48x1xf32, #tpu.memory_space<vmem>>, %arg3: memref<6x48xbf16, #tpu.memory_space<vmem>>, %arg4: memref<6x128xf32, #tpu.memory_space<vmem>>) attributes {dimension_semantics = [#tpu.dimension_semantics<parallel>], iteration_bounds = array<i64: 1>, scalar_prefetch = 0 : i64, scratch_operands = 0 : i64, tpu.core_type = #tpu.core_type<tc>, window_params = [{transform_indices = @transform_0, window_bounds = array<i64: 48, 128>}, {pipeline_mode = #tpu.pipeline_mode<synchronous>, transform_indices = @transform_1, window_bounds = array<i64: 2, 48, 1>}, {pipeline_mode = #tpu.pipeline_mode<synchronous>, transform_indices = @transform_2, window_bounds = array<i64: 6, 48>}, {transform_indices = @transform_3, window_bounds = array<i64: 6, 128>}]} {
    %c0 = arith.constant 0 : index
    %c0_0 = arith.constant 0 : index
    %0 = vector.load %arg1[%c0, %c0_0] : memref<48x128xbf16, #tpu.memory_space<vmem>>, vector<48x128xbf16>
    %1 = arith.extf %0 : vector<48x128xbf16> to vector<48x128xf32>
    %c0_1 = arith.constant 0 : index
    %c0_2 = arith.constant 0 : index
    %c0_3 = arith.constant 0 : index
    %2 = vector.load %arg2[%c0_1, %c0_2, %c0_3] : memref<2x48x1xf32, #tpu.memory_space<vmem>>, vector<1x48x1xf32>
    %3 = vector.shape_cast %2 : vector<1x48x1xf32> to vector<48x1xf32>
    %4 = vector.broadcast %3 : vector<48x1xf32> to vector<48x128xf32>
    %5 = arith.mulf %1, %4 : vector<48x128xf32>
    %c1 = arith.constant 1 : index
    %c0_4 = arith.constant 0 : index
    %c0_5 = arith.constant 0 : index
    %6 = vector.load %arg2[%c1, %c0_4, %c0_5] : memref<2x48x1xf32, #tpu.memory_space<vmem>>, vector<1x48x1xf32>
    %7 = vector.shape_cast %6 : vector<1x48x1xf32> to vector<48x1xf32>
    %8 = vector.broadcast %7 : vector<48x1xf32> to vector<48x128xf32>
    %9 = arith.addf %5, %8 : vector<48x128xf32>
    %cst = arith.constant 0.000000e+00 : f32
    %10 = vector.broadcast %cst : f32 to vector<48x128xf32>
    %11 = arith.maximumf %9, %10 : vector<48x128xf32>
    %c0_6 = arith.constant 0 : index
    %c0_7 = arith.constant 0 : index
    %12 = vector.load %arg3[%c0_6, %c0_7] : memref<6x48xbf16, #tpu.memory_space<vmem>>, vector<6x48xbf16>
    %13 = arith.truncf %11 : vector<48x128xf32> to vector<48x128xbf16>
    %cst_8 = arith.constant dense<0.000000e+00> : vector<6x128xf32>
    %14 = tpu.matmul %12, %13, %cst_8 {dimension_numbers = #tpu.dot_dimension_numbers<[1], [0], [0], [1], [0, 0, 1, 1], [], []>} : vector<6x48xbf16>, vector<48x128xbf16>, vector<6x128xf32> -> vector<6x128xf32>
    %c0_9 = arith.constant 0 : index
    %c0_10 = arith.constant 0 : index
    %15 = vector.load %arg4[%c0_9, %c0_10] : memref<6x128xf32, #tpu.memory_space<vmem>>, vector<6x128xf32>
    tpu.vector_store %arg4[%c0_9, %c0_10], %14 {strides = array<i32>} : memref<6x128xf32, #tpu.memory_space<vmem>>, vector<6x128xf32>,
    return
  }
  func.func @transform_0(%arg0: i32) -> (i32, i32) {
    %c0_i32 = arith.constant 0 : i32
    %c0_i32_0 = arith.constant 0 : i32
    return %c0_i32, %arg0 : i32, i32
  }
  func.func @transform_1(%arg0: i32) -> (i32, i32, i32) {
    %c0_i32 = arith.constant 0 : i32
    %c0_i32_0 = arith.constant 0 : i32
    %c0_i32_1 = arith.constant 0 : i32
    %c0_i32_2 = arith.constant 0 : i32
    return %c0_i32, %c0_i32_0, %c0_i32_1 : i32, i32, i32
  }
  func.func @transform_2(%arg0: i32) -> (i32, i32) {
    %c0_i32 = arith.constant 0 : i32
    %c0_i32_0 = arith.constant 0 : i32
    %c0_i32_1 = arith.constant 0 : i32
    return %c0_i32, %c0_i32_0 : i32, i32
  }
  func.func @transform_3(%arg0: i32) -> (i32, i32) {
    %c0_i32 = arith.constant 0 : i32
    %c0_i32_0 = arith.constant 0 : i32
    return %c0_i32, %arg0 : i32, i32
  }
}

</mosaic_0001>

<bundles_post_ra>
// kernel: tpu_custom_call.1
= control target key start
LH: loop header
LB: loop body
LE: loop exit
PB: predicated region body
PF: predicated region fallthrough
CT: control target
= control target key end

     0   :  { %v209_v2 = vmov 0   ;;  %s282_s0 = inlined_call_operand.vmem [shape: bf16[48,128], index: 0, kind: input, shape index: {}]   ;;  %s283_s1 = inlined_call_operand.vmem [shape: f32[2,48,1], index: 1, kind: input, shape index: {}]   ;;  %s284_s2 = inlined_call_operand.vmem [shape: bf16[6,48], index: 2, kind: input, shape index: {}]   ;;  %s285_s3 = inlined_call_operand.hbm [shape: f32[6,128], index: 3, kind: output, shape index: {}]  }
   0x1   :  { %v161_v0 = vld [vmem:[%s283_s1 + $0x50] sm:$0xff]  ;;  %v32_v1 = vld [vmem:[%s283_s1 + $0x20] sm:$0xff]  ;;  %181 = vset.pattern.permute.xlu1 %v209_v2  ;;  %180 = vset.pattern.permute.xlu0 %v209_v2 }
   0x2   :  { %v30_v3 = vld [vmem:[%s283_s1 + $0x10] sm:$0xff]  ;;  %99 = vperm.xlu1 %181, %v161_v0   ;;  %56 = vperm.xlu0 %180, %v32_v1  }
   0x3   :  { %182 = vset.pattern.permute.xlu2 %v209_v2 }
   0x4   :  { %46 = vperm.xlu2 %182, %v30_v3  }
   0x5   :  { %8 = vsyncpa [#allocation3], 0  ;;  %v162_v4 = vld [vmem:[%s283_s1 + $0x58] sm:$0xff]  ;;  %v33_v5 = vld [vmem:[%s283_s1 + $0x28] sm:$0xff]  ;;  %vm123_vm0 = vcmask 392192   ;;  %s210_s15 = smov [#allocation2]  }
   0x6   :  { %v31_v6 = vld [vmem:[%s283_s1 + $0x18] sm:$0xff]  ;;  %v160_v7 = vld [vmem:[%s283_s1 + $0x48] sm:$0xff]  ;;  %v159_v8 = vld [vmem:[%s283_s1 + $0x40] sm:$0xff]  ;;  %s146_s16 = sshll.u32 %s210_s15, 4  ;;  %s148_s19 = sshll.u32 %s285_s3, 4  ;;  %s147_s16 = int_to_ptr.vmem [resolvable:$true] %s146_s16  ;;  %s149_s19 = int_to_ptr.hbm [resolvable:$true] %s148_s19 }
   0x7   :  { %v28_v9 = vld [vmem:[%s283_s1] sm:$0xff]  ;;  %v157_v10 = vld [vmem:[%s283_s1 + $0x30] sm:$0xff]  ;;  %v29_v11 = vld [vmem:[%s283_s1 + $0x8] sm:$0xff] }
   0x8   :  { %v158_v12 = vld [vmem:[%s283_s1 + $0x38] sm:$0xff]  ;;  %v177_v14 = vld [vmem:[%s282_s0 + $0x10] sm:$0xff]   ;;  %v176_v21 = vld [vmem:[%s282_s0 + $0x8] sm:$0xff]  }
   0x9   :  { %v174_v17 = vunpack.c.l.bf16 %v177_v14  ;;  %v175_v20 = vunpack.c.h.bf16 %v177_v14  ;;  %v170_v26 = vunpack.c.l.bf16 %v176_v21  ;;  %v171_v27 = vunpack.c.h.bf16 %v176_v21  ;;  %v165_v35 = vld [vmem:[%s282_s0] sm:$0xff]  }
   0xa   :  { %104 = vperm.xlu1 %181, %v162_v4   ;;  %61 = vperm.xlu0 %180, %v33_v5   ;;  %v166_v40 = vunpack.c.l.bf16 %v165_v35  ;;  %v167_v44 = vunpack.c.h.bf16 %v165_v35  ;;  %v119_v55 = vld [vmem:[%s284_s2] sm:$0x7] }
   0xc   :  { %51 = vperm.xlu2 %182, %v31_v6  }
  0x12   :  { %94 = vperm.xlu1 %181, %v160_v7   ;;  %89 = vperm.xlu0 %180, %v159_v8  }
  0x14   :  { %36 = vperm.xlu2 %182, %v28_v9  }
  0x1a   :  { %79 = vperm.xlu1 %181, %v157_v10   ;;  %41 = vperm.xlu0 %180, %v29_v11  }
  0x1c   :  { %84 = vperm.xlu2 %182, %v158_v12  }
  0x5e   :  { %v47_v13 = vpop.permute.xlu2 %46 }
  0x5f   :  { %v66_v31 = vmul.f32 %v170_v26, %v47_v13 }
  0x66   :  { %v52_v18 = vpop.permute.xlu2 %51 }
  0x67   :  { %v67_v32 = vmul.f32 %v171_v27, %v52_v18 }
  0x6e   :  { %v37_v33 = vpop.permute.xlu2 %36 }
  0x6f   :  { %v64_v45 = vmul.f32 %v166_v40, %v37_v33 }
  0x74   :  { %v100_v15 = vpop.permute.xlu1 %99  ;;  %v57_v16 = vpop.permute.xlu0 %56 }
  0x75   :  { %v68_v19 = vmul.f32 %v174_v17, %v57_v16 }
  0x76   :  { %v85_v50 = vpop.permute.xlu2 %84 }
  0x77   :  { %v111_v25 = vadd.f32 %v100_v15, %v68_v19 }
  0x79   :  { %v117_v29 = vmax.f32 %v111_v25, 0.0 }
  0x7c   :  { %v105_v22 = vpop.permute.xlu1 %104  ;;  %v62_v23 = vpop.permute.xlu0 %61 }
  0x7d   :  { %v69_v24 = vmul.f32 %v175_v20, %v62_v23 }
  0x7f   :  { %v112_v28 = vadd.f32 %v105_v22, %v69_v24 }
  0x81   :  { %v118_v30 = vmax.f32 %v112_v28, 0.0 }
  0x83   :  { %v122_v34 = vpack.c.bf16 %v118_v30, %v117_v29 }
  0x84   :  { %v95_v36 = vpop.permute.xlu1 %94  ;;  %v90_v37 = vpop.permute.xlu0 %89 }
  0x85   :  { %v110_v38 = vadd.f32 %v95_v36, %v67_v32  ;;  %v109_v39 = vadd.f32 %v90_v37, %v66_v31  ;;  %132 = vmatpush.bf16.msra.mxu0 %v122_v34 }
  0x87   :  { %v116_v41 = vmax.f32 %v110_v38, 0.0  ;;  %v115_v42 = vmax.f32 %v109_v39, 0.0 }
  0x89   :  { %v121_v43 = vpack.c.bf16 %v116_v41, %v115_v42 }
  0x8b   :  { %133 = vmatpush.bf16.msra.mxu0 %v121_v43 }
  0x8c   :  { %v80_v46 = vpop.permute.xlu1 %79  ;;  %v42_v47 = vpop.permute.xlu0 %41 }
  0x8d   :  { %v107_v48 = vadd.f32 %v80_v46, %v64_v45  ;;  %v65_v49 = vmul.f32 %v167_v44, %v42_v47 }
  0x8f   :  { %v108_v51 = vadd.f32 %v85_v50, %v65_v49  ;;  %v113_v52 = vmax.f32 %v107_v48, 0.0 }
  0x91   :  { %v114_v53 = vmax.f32 %v108_v51, 0.0 }
  0x93   :  { %v120_v54 = vpack.c.bf16 %v114_v53, %v113_v52 }
  0x95   :  { %134 = vmatpush.bf16.msra.mxu0 %v120_v54 }
  0x98   :  { %163 = vmatmul.msk.bf16.vlgmr.msra.gmra.mxu0 %vm123_vm0, %v119_v55 }
 0x115   :  { %v136_v56 = vpop.f32.mrf.mxu0 }
 0x116   :  { %140 = vst [vmem:[#allocation2] sm:$0x3f] %v136_v56 }
 0x117   :  { %151 = dma.vmem_to_hbm [thread:$0]  %s147_s16, 128, %s149_s19, [#allocation3]  }
 0x11d   :  { %v138_v57 = vpop.f32.mrf.mxu0 }
 0x11e   :  { %207 = dma.done.wait [#allocation3], 128  }
 0x11f   :  { %208 = vsyncadd [#allocation3], 4294967168 }
 0x120   :  { %156 = vsyncpa [#allocation3], 1 }

</bundles_post_ra>
